<compile_context>
chip_gen: v7x
topology: tpu7x:2x2x1
jax: 0.10.0
libtpu: 0.0.40
codegen_flags: <defaults>
</compile_context>

<pallas_src>
import jax
import jax.numpy as jnp
from jax.experimental import pallas as pl
from jax.experimental.pallas import tpu as pltpu

_LANE = 128


def _round_up(n, m):
    return ((n + m - 1) // m) * m


def _mlp_kernel(xT_ref, w1_ref, b1_ref, w2_ref, b2_ref, w3_ref, b3_ref, o_ref):
    # xT_ref: (18, TB) — batch on the lane axis.  Weights: (out, in).  Biases: (out, 1).
    xT = xT_ref[...]

    h1 = jnp.dot(w1_ref[...], xT, preferred_element_type=jnp.float32) + b1_ref[...]
    h1 = jnp.maximum(h1, 0.0)                                   # ReLU, f32  -> (32, TB)

    h2 = jnp.dot(w2_ref[...], h1.astype(w2_ref.dtype),
                 preferred_element_type=jnp.float32) + b2_ref[...]
    h2 = jnp.maximum(h2, 0.0)                                   # ReLU, f32  -> (16, TB)

    h3 = jnp.dot(w3_ref[...], h2.astype(w3_ref.dtype),
                 preferred_element_type=jnp.float32) + b3_ref[...]
    o_ref[...] = jax.nn.sigmoid(h3).astype(o_ref.dtype)         # Sigmoid    -> (10, TB)


def movie_model_forward(x, params, *, block_b=8192, vmem_limit_bytes=48 * 1024 * 1024):
    """x: (B, 18). params: w1 (32,18), b1 (32,1), w2 (16,32), b2 (16,1), w3 (10,16), b3 (10,1).
    Weights may be float32 or bfloat16; returns (B, 10) float32 probabilities."""
    B, F = x.shape
    assert F == 18, f"expected 18 input features, got {F}"

    w1, b1 = params["w1"], params["b1"]
    w2, b2 = params["w2"], params["b2"]
    w3, b3 = params["w3"], params["b3"]
    cdt = w1.dtype  # compute dtype for matmul inputs (f32 or bf16)

    # Batch tile: multiple of 128 lanes, capped by block_b; pad batch to a multiple of it.
    tb = min(int(block_b), _round_up(B, _LANE))
    tb = _round_up(tb, _LANE)
    Bp = _round_up(B, tb)
    grid = (Bp // tb,)

    # Transpose + zero-pad so batch sits on the lane axis: (18, Bp).
    xT = jnp.pad(x.astype(cdt).T, ((0, 0), (0, Bp - B)))

    # Weights/biases: full blocks with constant index_map -> VMEM-resident across steps.
    resident = lambda a: pl.BlockSpec(a.shape, lambda i: (0, 0))

    outT = pl.pallas_call(
        _mlp_kernel,
        out_shape=jax.ShapeDtypeStruct((10, Bp), jnp.float32),
        grid=grid,
        in_specs=[
            pl.BlockSpec((18, tb), lambda i: (0, i)),   # batch-tiled input
            resident(w1), resident(b1),
            resident(w2), resident(b2),
            resident(w3), resident(b3),
        ],
        out_specs=pl.BlockSpec((10, tb), lambda i: (0, i)),     # lane-dense output block
        compiler_params=pltpu.CompilerParams(
            dimension_semantics=("parallel",),                  # shard batch across TCs
            vmem_limit_bytes=vmem_limit_bytes,
        ),
    )(xT, w1, b1, w2, b2, w3, b3)

    # Back to the PyTorch (batch, features) convention; drop batch padding.
    return outT[:, :B].T


def init_params(key, dtype=jnp.float32):
    """PyTorch-style init. Weights stored as (out, in); biases as (out, 1) in float32."""
    ks = jax.random.split(key, 6)

    def linear(kw, kb, fan_in, fan_out):
        bound = 1.0 / (fan_in ** 0.5)
        w = jax.random.uniform(kw, (fan_out, fan_in), jnp.float32, -bound, bound).astype(dtype)
        b = jax.random.uniform(kb, (fan_out, 1), jnp.float32, -bound, bound)
        return w, b

    w1, b1 = linear(ks[0], ks[1], 18, 32)
    w2, b2 = linear(ks[2], ks[3], 32, 16)
    w3, b3 = linear(ks[4], ks[5], 16, 10)
    return {"w1": w1, "b1": b1, "w2": w2, "b2": b2, "w3": w3, "b3": b3}


def _reference_forward(x, p):
    w1 = p["w1"].astype(jnp.float32); b1 = p["b1"].astype(jnp.float32)
    w2 = p["w2"].astype(jnp.float32); b2 = p["b2"].astype(jnp.float32)
    w3 = p["w3"].astype(jnp.float32); b3 = p["b3"].astype(jnp.float32)
    h = jnp.maximum(x @ w1.T + b1[:, 0], 0.0)
    h = jnp.maximum(h @ w2.T + b2[:, 0], 0.0)
    return jax.nn.sigmoid(h @ w3.T + b3[:, 0])


if __name__ == "__main__":
    key = jax.random.PRNGKey(0)
    k_x, k_x2, k_p = jax.random.split(key, 3)

    fwd = jax.jit(movie_model_forward, static_argnames=("block_b",))

    # --- small f32 check (tight tolerance) -----------------------------------
    x = jax.random.normal(k_x, (8, 18), dtype=jnp.float32)
    p32 = init_params(k_p, dtype=jnp.float32)
    out = jax.block_until_ready(fwd(x, p32, block_b=8192))
    ref = _reference_forward(x, p32)
    assert out.shape == (8, 10)
    assert jnp.allclose(out, ref, atol=1e-4, rtol=1e-4)

    # --- bf16 serving config; batch chosen to exercise the grid + padding ----
    xb = jax.random.normal(k_x2, (300, 18), dtype=jnp.float32)
    pbf = dict(p32)
    for k in ("w1", "w2", "w3"):
        pbf[k] = p32[k].astype(jnp.bfloat16)
    outb = jax.block_until_ready(fwd(xb, pbf, block_b=128))   # grid = 3 steps, padded to 384
    refb = _reference_forward(xb, {k: v.astype(jnp.float32) for k, v in pbf.items()})
    assert outb.shape == (300, 10)
    assert jnp.allclose(outb, refb, atol=5e-2, rtol=5e-2)

    print("KERNEL_OK")
</pallas_src>

<mosaic_0001>
module attributes {stable_mosaic.version = 11 : i64} {
  func.func @_mlp_kernel(%arg0: i32, %arg1: memref<18x128xf32, #tpu.memory_space<vmem>>, %arg2: memref<32x18xf32, #tpu.memory_space<vmem>>, %arg3: memref<32x1xf32, #tpu.memory_space<vmem>>, %arg4: memref<16x32xf32, #tpu.memory_space<vmem>>, %arg5: memref<16x1xf32, #tpu.memory_space<vmem>>, %arg6: memref<10x16xf32, #tpu.memory_space<vmem>>, %arg7: memref<10x1xf32, #tpu.memory_space<vmem>>, %arg8: memref<10x128xf32, #tpu.memory_space<vmem>>) attributes {dimension_semantics = [#tpu.dimension_semantics<parallel>], iteration_bounds = array<i64: 1>, scalar_prefetch = 0 : i64, scratch_operands = 0 : i64, tpu.core_type = #tpu.core_type<tc>, window_params = [{transform_indices = @transform_0, window_bounds = array<i64: 18, 128>}, {pipeline_mode = #tpu.pipeline_mode<synchronous>, transform_indices = @transform_1, window_bounds = array<i64: 32, 18>}, {pipeline_mode = #tpu.pipeline_mode<synchronous>, transform_indices = @transform_2, window_bounds = array<i64: 32, 1>}, {pipeline_mode = #tpu.pipeline_mode<synchronous>, transform_indices = @transform_3, window_bounds = array<i64: 16, 32>}, {pipeline_mode = #tpu.pipeline_mode<synchronous>, transform_indices = @transform_4, window_bounds = array<i64: 16, 1>}, {pipeline_mode = #tpu.pipeline_mode<synchronous>, transform_indices = @transform_5, window_bounds = array<i64: 10, 16>}, {pipeline_mode = #tpu.pipeline_mode<synchronous>, transform_indices = @transform_6, window_bounds = array<i64: 10, 1>}, {transform_indices = @transform_7, window_bounds = array<i64: 10, 128>}]} {
    %c0 = arith.constant 0 : index
    %c0_0 = arith.constant 0 : index
    %0 = vector.load %arg1[%c0, %c0_0] : memref<18x128xf32, #tpu.memory_space<vmem>>, vector<18x128xf32>
    %c0_1 = arith.constant 0 : index
    %c0_2 = arith.constant 0 : index
    %1 = vector.load %arg2[%c0_1, %c0_2] : memref<32x18xf32, #tpu.memory_space<vmem>>, vector<32x18xf32>
    %cst = arith.constant dense<0.000000e+00> : vector<32x128xf32>
    %2 = tpu.matmul %1, %0, %cst {dimension_numbers = #tpu.dot_dimension_numbers<[1], [0], [0], [1], [0, 0, 1, 1], [], []>} : vector<32x18xf32>, vector<18x128xf32>, vector<32x128xf32> -> vector<32x128xf32>
    %c0_3 = arith.constant 0 : index
    %c0_4 = arith.constant 0 : index
    %3 = vector.load %arg3[%c0_3, %c0_4] : memref<32x1xf32, #tpu.memory_space<vmem>>, vector<32x1xf32>
    %4 = vector.broadcast %3 : vector<32x1xf32> to vector<32x128xf32>
    %5 = arith.addf %2, %4 : vector<32x128xf32>
    %cst_5 = arith.constant 0.000000e+00 : f32
    %6 = vector.broadcast %cst_5 : f32 to vector<32x128xf32>
    %7 = arith.maximumf %5, %6 : vector<32x128xf32>
    %c0_6 = arith.constant 0 : index
    %c0_7 = arith.constant 0 : index
    %8 = vector.load %arg4[%c0_6, %c0_7] : memref<16x32xf32, #tpu.memory_space<vmem>>, vector<16x32xf32>
    %cst_8 = arith.constant dense<0.000000e+00> : vector<16x128xf32>
    %9 = tpu.matmul %8, %7, %cst_8 {dimension_numbers = #tpu.dot_dimension_numbers<[1], [0], [0], [1], [0, 0, 1, 1], [], []>} : vector<16x32xf32>, vector<32x128xf32>, vector<16x128xf32> -> vector<16x128xf32>
    %c0_9 = arith.constant 0 : index
    %c0_10 = arith.constant 0 : index
    %10 = vector.load %arg5[%c0_9, %c0_10] : memref<16x1xf32, #tpu.memory_space<vmem>>, vector<16x1xf32>
    %11 = vector.broadcast %10 : vector<16x1xf32> to vector<16x128xf32>
    %12 = arith.addf %9, %11 : vector<16x128xf32>
    %cst_11 = arith.constant 0.000000e+00 : f32
    %13 = vector.broadcast %cst_11 : f32 to vector<16x128xf32>
    %14 = arith.maximumf %12, %13 : vector<16x128xf32>
    %c0_12 = arith.constant 0 : index
    %c0_13 = arith.constant 0 : index
    %15 = vector.load %arg6[%c0_12, %c0_13] : memref<10x16xf32, #tpu.memory_space<vmem>>, vector<10x16xf32>
    %cst_14 = arith.constant dense<0.000000e+00> : vector<10x128xf32>
    %16 = tpu.matmul %15, %14, %cst_14 {dimension_numbers = #tpu.dot_dimension_numbers<[1], [0], [0], [1], [0, 0, 1, 1], [], []>} : vector<10x16xf32>, vector<16x128xf32>, vector<10x128xf32> -> vector<10x128xf32>
    %c0_15 = arith.constant 0 : index
    %c0_16 = arith.constant 0 : index
    %17 = vector.load %arg7[%c0_15, %c0_16] : memref<10x1xf32, #tpu.memory_space<vmem>>, vector<10x1xf32>
    %18 = vector.broadcast %17 : vector<10x1xf32> to vector<10x128xf32>
    %19 = arith.addf %16, %18 : vector<10x128xf32>
    %20 = arith.negf %19 : vector<10x128xf32>
    %21 = math.exp %20 : vector<10x128xf32>
    %cst_17 = arith.constant 1.000000e+00 : f32
    %22 = vector.broadcast %cst_17 : f32 to vector<10x128xf32>
    %23 = arith.addf %22, %21 : vector<10x128xf32>
    %24 = arith.divf %22, %23 : vector<10x128xf32>
    %c0_18 = arith.constant 0 : index
    %c0_19 = arith.constant 0 : index
    %25 = vector.load %arg8[%c0_18, %c0_19] : memref<10x128xf32, #tpu.memory_space<vmem>>, vector<10x128xf32>
    tpu.vector_store %arg8[%c0_18, %c0_19], %24 {strides = array<i32>} : memref<10x128xf32, #tpu.memory_space<vmem>>, vector<10x128xf32>,
    return
  }
  func.func @transform_0(%arg0: i32) -> (i32, i32) {
    %c0_i32 = arith.constant 0 : i32
    %c0_i32_0 = arith.constant 0 : i32
    return %c0_i32, %arg0 : i32, i32
  }
  func.func @transform_1(%arg0: i32) -> (i32, i32) {
    %c0_i32 = arith.constant 0 : i32
    %c0_i32_0 = arith.constant 0 : i32
    %c0_i32_1 = arith.constant 0 : i32
    return %c0_i32, %c0_i32_0 : i32, i32
  }
  func.func @transform_2(%arg0: i32) -> (i32, i32) {
    %c0_i32 = arith.constant 0 : i32
    %c0_i32_0 = arith.constant 0 : i32
    %c0_i32_1 = arith.constant 0 : i32
    return %c0_i32, %c0_i32_0 : i32, i32
  }
  func.func @transform_3(%arg0: i32) -> (i32, i32) {
    %c0_i32 = arith.constant 0 : i32
    %c0_i32_0 = arith.constant 0 : i32
    %c0_i32_1 = arith.constant 0 : i32
    return %c0_i32, %c0_i32_0 : i32, i32
  }
  func.func @transform_4(%arg0: i32) -> (i32, i32) {
    %c0_i32 = arith.constant 0 : i32
    %c0_i32_0 = arith.constant 0 : i32
    %c0_i32_1 = arith.constant 0 : i32
    return %c0_i32, %c0_i32_0 : i32, i32
  }
  func.func @transform_5(%arg0: i32) -> (i32, i32) {
    %c0_i32 = arith.constant 0 : i32
    %c0_i32_0 = arith.constant 0 : i32
    %c0_i32_1 = arith.constant 0 : i32
    return %c0_i32, %c0_i32_0 : i32, i32
  }
  func.func @transform_6(%arg0: i32) -> (i32, i32) {
    %c0_i32 = arith.constant 0 : i32
    %c0_i32_0 = arith.constant 0 : i32
    %c0_i32_1 = arith.constant 0 : i32
    return %c0_i32, %c0_i32_0 : i32, i32
  }
  func.func @transform_7(%arg0: i32) -> (i32, i32) {
    %c0_i32 = arith.constant 0 : i32
    %c0_i32_0 = arith.constant 0 : i32
    return %c0_i32, %arg0 : i32, i32
  }
}

</mosaic_0001>

<bundles_post_ra>
// kernel: movie_model_forward.1
= control target key start
LH: loop header
LB: loop body
LE: loop exit
PB: predicated region body
PF: predicated region fallthrough
CT: control target
= control target key end

     0   :  { %vm57_vm0 = vcmask 146432   ;;  %v460_v2 = vmov 0   ;;  %vm70_vm1 = vcmask 1041408   ;;  %vm177_vm2 = vcmask 261120   ;;  %s570_s0 = inlined_call_operand.vmem [shape: f32[18,128], index: 0, kind: input, shape index: {}]   ;;  %s571_s1 = inlined_call_operand.vmem [shape: f32[32,18], index: 1, kind: input, shape index: {}]   ;;  %s572_s2 = inlined_call_operand.vmem [shape: f32[32,1], index: 2, kind: input, shape index: {}]   ;;  %s573_s4 = inlined_call_operand.vmem [shape: f32[16,1], index: 4, kind: input, shape index: {}]   ;;  %s574_s6 = inlined_call_operand.vmem [shape: f32[10,1], index: 6, kind: input, shape index: {}]   ;;  %s575_s3 = inlined_call_operand.vmem [shape: f32[16,32], index: 3, kind: input, shape index: {}]   ;;  %s576_s5 = inlined_call_operand.vmem [shape: f32[10,16], index: 5, kind: input, shape index: {}]   ;;  %s577_s7 = inlined_call_operand.vmem [shape: f32[10,128], index: 7, kind: output, shape index: {}]  }
   0x1   :  { %v26_v0 = vld [vmem:[%s570_s0] sm:$0xff]  ;;  %v27_v1 = vld [vmem:[%s570_s0 + $0x8] sm:$0xff]  ;;  %450 = vset.pattern.permute.xlu0 %v460_v2  ;;  %451 = vset.pattern.permute.xlu1 %v460_v2  ;;  %v28_v5 = vld [vmem:[%s570_s0 + $0x10] sm:$0x3]  ;;  %vm275_vm3 = vcmask 130048  }
   0x2   :  { %v433_v3 = vpack.c.bf16 %v27_v1, %v26_v0  ;;  %v29_v4 = vld [vmem:[%s571_s1] sm:$0xff]  ;;  %v35_v7 = vld [vmem:[%s572_s2 + $0x10] sm:$0xff]  ;;  %v34_v8 = vld [vmem:[%s572_s2 + $0x8] sm:$0xff] }
   0x3   :  { %409 = vmatprep.mubr.msk.f32.mxu0 %vm57_vm0, %v29_v4  ;;  %v33_v6 = vld [vmem:[%s572_s2] sm:$0xff]  ;;  %49 = vperm.xlu1 %451, %v35_v7   ;;  %v36_v9 = vld [vmem:[%s572_s2 + $0x18] sm:$0xff]  ;;  %v30_v10 = vld [vmem:[%s571_s1 + $0x8] sm:$0xff] }
   0x4   :  { %434 = vmatprep.subr.bf16.mxu0 %v433_v3  ;;  %39 = vperm.xlu0 %450, %v33_v6   ;;  %v31_v11 = vld [vmem:[%s571_s1 + $0x10] sm:$0xff]  ;;  %v165_v12 = vld [vmem:[%s573_s4] sm:$0xff]  ;;  %v166_v13 = vld [vmem:[%s573_s4 + $0x8] sm:$0xff] }
   0x5   :  { %436 = vmatpush3.bf16.msra.mxu0 %v433_v3  ;;  %v32_v14 = vld [vmem:[%s571_s1 + $0x18] sm:$0xff]  ;;  %v263_v15 = vld [vmem:[%s574_s6] sm:$0xff]  ;;  %v264_v16 = vld [vmem:[%s574_s6 + $0x8] sm:$0x3] }
   0x6   :  { %407 = vmatprep.subr.msk.mxu0 %vm70_vm1, %v28_v5  ;;  %v163_v17 = vld [vmem:[%s575_s3] sm:$0xff]  ;;  %v164_v36 = vld [vmem:[%s575_s3 + $0x8] sm:$0xff] }
   0x7   :  { %54 = vperm.xlu1 %451, %v36_v9   ;;  %423 = vmatprep.mubr.msk.f32.mxu1 %vm177_vm2, %v163_v17  ;;  %v261_v37 = vld [vmem:[%s576_s5] sm:$0xff]  ;;  %v262_v47 = vld [vmem:[%s576_s5 + $0x8] sm:$0x3] }
   0x8   :  { %44 = vperm.xlu0 %450, %v34_v8  }
   0x9   :  { %408 = vmatpush3.msk.msra.mxu0 %vm70_vm1, %v28_v5 }
   0xa   :  { %410 = vmatmul.mubr.msk.f32.vlgmr.msra.gmra.mrb[0].mxu0 %vm57_vm0, %v30_v10 }
   0xb   :  { %412 = vmatprep.mubr.msk.f32.mxu0 %vm57_vm0, %v31_v11  ;;  %174 = vperm.xlu1 %451, %v166_v13  }
   0xc   :  { %169 = vperm.xlu0 %450, %v165_v12  }
   0xe   :  { %413 = vmatmul.mubr.msk.f32.gmra.mrb[2].mxu0 %vm57_vm0, %v32_v14 }
   0xf   :  { %272 = vperm.xlu1 %451, %v264_v16  }
  0x10   :  { %267 = vperm.xlu0 %450, %v263_v15  }
  0x82   :  { %v50_v19 = vpop.permute.xlu1 %49 }
  0x83   :  { %v40_v18 = vpop.permute.xlu0 %39 }
  0x86   :  { %v55_v26 = vpop.permute.xlu1 %54 }
  0x87   :  { %v45_v20 = vpop.permute.xlu0 %44 }
  0x8a   :  { %v175_v38 = vpop.permute.xlu1 %174 }
  0x8b   :  { %v170_v40 = vpop.permute.xlu0 %169 }
  0x8e   :  { %v273_v48 = vpop.permute.xlu1 %272 }
  0x8f   :  { %v268_v50 = vpop.permute.xlu0 %267 }
  0xdd   :  { %v411_v21 = vpop.f32.mrb[0].mxu0 }
  0xde   :  { %v146_v22 = vadd.f32 %v411_v21, %v45_v20  ;;  %v140_v23 = vpop.f32.mrb[1].mxu0 }
  0xdf   :  { %v141_v24 = vadd.f32 %v140_v23, %v40_v18 }
  0xe0   :  { %v160_v25 = vmax.f32 %v146_v22, 0.0 }
  0xe1   :  { %v159_v27 = vmax.f32 %v141_v24, 0.0  ;;  %v414_v28 = vpop.f32.mrb[2].mxu0 }
  0xe2   :  { %v156_v29 = vadd.f32 %v414_v28, %v55_v26  ;;  %v150_v30 = vpop.f32.mrb[3].mxu0 }
  0xe3   :  { %v151_v31 = vadd.f32 %v150_v30, %v50_v19  ;;  %v437_v32 = vpack.c.bf16 %v160_v25, %v159_v27 }
  0xe4   :  { %v162_v33 = vmax.f32 %v156_v29, 0.0 }
  0xe5   :  { %v161_v34 = vmax.f32 %v151_v31, 0.0  ;;  %438 = vmatprep.subr.bf16.mxu1 %v437_v32 }
  0xe6   :  { %440 = vmatpush3.bf16.msra.mxu1 %v437_v32 }
  0xe7   :  { %v441_v35 = vpack.c.bf16 %v162_v33, %v161_v34 }
  0xe9   :  { %442 = vmatprep.subr.bf16.mxu1 %v441_v35 }
  0xea   :  { %444 = vmatpush3.bf16.msra.mxu1 %v441_v35 }
  0xed   :  { %424 = vmatmul.mubr.msk.f32.vlgmr.msra.gmra.mrb[0].mxu1 %vm177_vm2, %v164_v36 }
  0xee   :  { %430 = vmatprep.mubr.msk.f32.mxu1 %vm275_vm3, %v261_v37 }
 0x1c0   :  { %v425_v39 = vpop.f32.mrb[0].mxu1 }
 0x1c1   :  { %v256_v41 = vadd.f32 %v425_v39, %v175_v38  ;;  %v250_v42 = vpop.f32.mrb[1].mxu1 }
 0x1c2   :  { %v251_v43 = vadd.f32 %v250_v42, %v170_v40 }
 0x1c3   :  { %v260_v44 = vmax.f32 %v256_v41, 0.0 }
 0x1c4   :  { %v259_v45 = vmax.f32 %v251_v43, 0.0 }
 0x1c6   :  { %v445_v46 = vpack.c.bf16 %v260_v44, %v259_v45 }
 0x1c8   :  { %446 = vmatprep.subr.bf16.mxu1 %v445_v46 }
 0x1c9   :  { %448 = vmatpush3.bf16.msra.mxu1 %v445_v46 }
 0x1cc   :  { %431 = vmatmul.mubr.msk.f32.vlgmr.msra.gmra.mrb[2].mxu1 %vm275_vm3, %v262_v47 }
 0x29f   :  { %v432_v49 = vpop.f32.mrb[2].mxu1 }
 0x2a0   :  { %v354_v51 = vadd.f32 %v432_v49, %v273_v48  ;;  %v348_v52 = vpop.f32.mrb[3].mxu1 }
 0x2a1   :  { %v349_v53 = vadd.f32 %v348_v52, %v268_v50 }
 0x2a2   :  { %v385_v54 = vmul.f32 -1.442695, %v354_v51 }
 0x2a3   :  { %v384_v55 = vmul.f32 -1.442695, %v349_v53 }
 0x2a4   :  { %452 = vpow2.f32 %v385_v54 }
 0x2a5   :  { %454 = vpow2.f32 %v384_v55 }
 0x2ae   :  { %v453_v56 = vpop.eup %452 }
 0x2af   :  { %v455_v57 = vpop.eup %454  ;;  %v364_v58 = vadd.f32 1.0, %v453_v56 }
 0x2b0   :  { %v363_v59 = vadd.f32 1.0, %v455_v57 }
 0x2b1   :  { %456 = vrcp.f32 %v364_v58 }
 0x2b2   :  { %458 = vrcp.f32 %v363_v59 }
 0x2bb   :  { %v457_v60 = vpop.eup %456 }
 0x2bc   :  { %v459_v61 = vpop.eup %458  ;;  %370 = vst [vmem:[%s577_s7 + $0x8] sm:$0x3] %v457_v60 }
 0x2bd   :  { %369 = vst [vmem:[%s577_s7] sm:$0xff] %v459_v61 }

</bundles_post_ra>
